<compile_context>
chip_gen: v6e
topology: v6e:2x2x1
jax: 0.10.0
libtpu: 0.0.40
codegen_flags: <defaults>
</compile_context>

<pallas_src>
import functools

import jax
import jax.numpy as jnp
from jax.experimental import pallas as pl
from jax.experimental.pallas import tpu as pltpu


def _round_up(v, m):
    return ((v + m - 1) // m) * m


def _default_vmem_budget():
    """Chip-aware double-buffered VMEM budget for the tile plan."""
    try:
        info = pltpu.get_tpu_info()
        cap = int(getattr(info, "vmem_capacity_bytes", 64 << 20))
    except Exception:  # pragma: no cover - conservative fallback
        cap = 64 << 20
    # Leave ~half of physical VMEM for the compiler / other allocations:
    # v5e/v6e (128 MiB) -> 64 MiB budget, v7x (64 MiB) -> 32 MiB budget.
    return max(16 << 20, min(cap // 2, 80 << 20))


def _ncm_kernel(x_ref, mt_ref, m2_ref, var_ref, prob_ref, dist_ref, *scratch,
                deep_nno, num_classes, class_padded, multi_f):
    """One grid step.

    x_ref:    (tb, tf)     input features tile (matmul dtype, feeds MXU)
    mt_ref:   (tf, C_pad)  pre-transposed class means tile
    m2_ref:   (1,  C_pad)  precomputed ||m||^2 per class (f32)
    var_ref:  (1,)         SMEM scalar std -- used iff not deep_nno
    prob_ref: (tb, C_pad)  f32 output; doubles as the x@m^T accumulator when
                           the feature axis is chunked (multi_f)
    dist_ref: (tb, C_pad)  f32 output (cumulative_diff)
    scratch:  [(tb, 1) f32 ||x||^2 accumulator]  only when multi_f
    """
    x = x_ref[...]
    part_xm = jnp.dot(x, mt_ref[...], preferred_element_type=jnp.float32)
    xf = x.astype(jnp.float32)
    part_x2 = jnp.sum(xf * xf, axis=-1, keepdims=True)

    def epilogue(xm, x2):
        m2 = m2_ref[...].astype(jnp.float32)                 # (1, C_pad)
        if deep_nno:
            # cumulative_diff = sum((x - m)^2); prob = exp(-diff/2)
            sq = jnp.maximum(x2 + m2 - 2.0 * xm, 0.0)
            prob = jnp.exp(-0.5 * sq)
            dist = sq
        else:
            # x is scaled by 1/std; fold the scalar into the epilogue instead
            # of rescaling the (tb, tf) blocks:  ||x/s - m||^2
            #   = (1/s^2)||x||^2 + ||m||^2 - (2/s) x.m
            inv = 1.0 / var_ref[0]
            sq = jnp.maximum((inv * inv) * x2 + m2 - (2.0 * inv) * xm, 0.0)
            dist = jnp.sqrt(sq)
            exponent = -dist
            if class_padded:   # static gate: only emit the mask when needed
                col = jax.lax.broadcasted_iota(jnp.int32, exponent.shape, 1)
                exponent = jnp.where(col < num_classes, exponent, -jnp.inf)
            row_max = jnp.max(exponent, axis=1, keepdims=True)
            e = jnp.exp(exponent - row_max)                  # padded lanes -> 0
            denom = jnp.sum(e, axis=1, keepdims=True)
            prob = e / denom                                  # exact softmax
        prob_ref[...] = prob.astype(prob_ref.dtype)
        dist_ref[...] = dist.astype(dist_ref.dtype)

    if not multi_f:
        # Full-F block: single step per batch tile, no accumulators.
        epilogue(part_xm, part_x2)
    else:
        (acc_x2,) = scratch
        f = pl.program_id(1)
        nf = pl.num_programs(1)

        @pl.when(f == 0)
        def _init():
            prob_ref[...] = jnp.zeros_like(prob_ref)
            acc_x2[...] = jnp.zeros_like(acc_x2)

        prob_ref[...] += part_xm          # accumulate straight into the output
        acc_x2[...] += part_x2

        @pl.when(f == nf - 1)
        def _finalize():
            epilogue(prob_ref[...], acc_x2[...])


def ncm_forward(x, means, variance, *, deep_nno=False, block_b=256,
                block_f=2048, matmul_dtype=None, vmem_budget_bytes=None):
    """Pallas implementation of NCM_classifier.forward (eval mode:
    use_variance=False, so std == self.variance).

    Returns (probs, exponent, cumulative_diff), each (B, C) float32.
    Set matmul_dtype=jnp.bfloat16 on v6e/v7x for higher MXU throughput
    (distances change at the ~1e-3 level)."""
    B, F = x.shape
    C, Fm = means.shape
    assert F == Fm, "feature dims must match"

    mm_dtype = jnp.dtype(matmul_dtype) if matmul_dtype is not None else jnp.dtype(x.dtype)
    isz = mm_dtype.itemsize

    # --- tile plan ---------------------------------------------------------
    C_pad = _round_up(max(C, 1), 128)            # lane-dense outputs / MXU N
    budget = int(vmem_budget_bytes) if vmem_budget_bytes is not None \
        else _default_vmem_budget()

    # Batch tiling: balance tiles to minimize padding, and prefer >=2 tiles
    # so the "parallel" axis can shard across both v7x TensorCores.
    nb = -(-B // block_b)
    if nb == 1 and B >= 16:
        nb = 2
    tb = _round_up(-(-B // nb), 8)

    def footprint(tb_, tf_, multi):
        fb = (2 * tb_ * tf_ * isz            # x tile (double buffered)
              + 2 * tf_ * C_pad * isz        # means^T tile
              + 2 * 8 * C_pad * 4            # ||m||^2 row (sublane padded)
              + 2 * 2 * tb_ * C_pad * 4)     # two f32 output tiles
        if multi:
            fb += tb_ * 128 * 4              # ||x||^2 accumulator (lane pad)
        return fb

    # Feature tiling: prefer the full feature dim (means^T streamed exactly
    # once, no reduction axis); otherwise the largest 128-multiple chunk that
    # fits; shrink the batch tile only if that is still not enough.
    while True:
        if footprint(tb, F, False) <= budget:
            tf, F_pad, multi_f = F, F, False
            break
        tf = max(128, (min(block_f, F) // 128) * 128)
        while tf > 128 and footprint(tb, tf, True) > budget:
            tf = max(128, ((tf // 2) // 128) * 128)
        if footprint(tb, tf, True) <= budget or tb <= 8:
            F_pad, multi_f = _round_up(F, tf), True
            break
        tb = max(8, _round_up(tb // 2, 8))

    B_pad = _round_up(B, tb)
    grid_b = B_pad // tb

    # --- one-time HBM layout work in the wrapper ---------------------------
    xp = x.astype(mm_dtype) if mm_dtype != x.dtype else x
    if (B_pad, F_pad) != (B, F):
        xp = jnp.pad(xp, ((0, B_pad - B), (0, F_pad - F)))
    mp = means
    if (C_pad, F_pad) != (C, F):
        mp = jnp.pad(mp, ((0, C_pad - C), (0, F_pad - F)))
    means_t = mp.T.astype(mm_dtype)                                # (F_pad, C_pad)
    m2 = jnp.sum(mp.astype(jnp.float32) ** 2, axis=1)[None, :]     # (1, C_pad) f32
    variance = jnp.asarray(variance, jnp.float32).reshape((1,))

    kernel = functools.partial(_ncm_kernel, deep_nno=deep_nno, num_classes=C,
                               class_padded=(C_pad != C), multi_f=multi_f)

    out_shape = tuple(jax.ShapeDtypeStruct((B_pad, C_pad), jnp.float32)
                      for _ in range(2))

    if multi_f:
        grid = (grid_b, F_pad // tf)
        in_specs = [
            pl.BlockSpec((tb, tf), lambda b, f: (b, f)),            # x tile
            pl.BlockSpec((tf, C_pad), lambda b, f: (f, 0)),         # means^T
            pl.BlockSpec((1, C_pad), lambda b, f: (0, 0)),          # ||m||^2
            pl.BlockSpec(memory_space=pltpu.MemorySpace.SMEM),      # std scalar
        ]
        out_spec = pl.BlockSpec((tb, C_pad), lambda b, f: (b, 0))
        scratch_shapes = [pltpu.VMEM((tb, 1), jnp.float32)]         # ||x||^2 acc
        semantics = ("parallel", "arbitrary")
        means_reads = grid_b        # re-streamed per batch tile (f changes)
    else:
        grid = (grid_b,)
        in_specs = [
            pl.BlockSpec((tb, F_pad), lambda b: (b, 0)),            # x tile
            pl.BlockSpec((F_pad, C_pad), lambda b: (0, 0)),         # means^T (resident)
            pl.BlockSpec((1, C_pad), lambda b: (0, 0)),             # ||m||^2
            pl.BlockSpec(memory_space=pltpu.MemorySpace.SMEM),      # std scalar
        ]
        out_spec = pl.BlockSpec((tb, C_pad), lambda b: (b, 0))
        scratch_shapes = []
        semantics = ("parallel",)
        means_reads = 1             # constant block index -> fetched once

    cost = pl.CostEstimate(
        flops=2 * B_pad * C_pad * F_pad + 2 * B_pad * F_pad + 10 * B_pad * C_pad,
        transcendentals=B_pad * C_pad,
        bytes_accessed=(B_pad * F_pad * isz
                        + means_reads * F_pad * C_pad * isz
                        + C_pad * 4 + 4
                        + 2 * B_pad * C_pad * 4),
    )

    vmem_limit = min(max(budget, footprint(tb, tf, multi_f)) + (8 << 20),
                     112 << 20)

    probs, dist = pl.pallas_call(
        kernel,
        out_shape=out_shape,
        grid_spec=pltpu.PrefetchScalarGridSpec(
            num_scalar_prefetch=0,
            grid=grid,
            in_specs=in_specs,
            out_specs=(out_spec, out_spec),
            scratch_shapes=scratch_shapes,
        ),
        compiler_params=pltpu.CompilerParams(
            dimension_semantics=semantics,
            vmem_limit_bytes=vmem_limit),
        cost_estimate=cost,
    )(xp, means_t, m2, variance)

    cumulative = dist[:B, :C]
    probs = probs[:B, :C]
    # exponent reconstructed in the wrapper (fused into the slice) instead of
    # being a third kernel output.
    exponent = (-0.5 * cumulative) if deep_nno else (-cumulative)
    return probs, exponent, cumulative


def _ncm_reference(x, means, variance, *, deep_nno):
    """Pure-JAX reference mirroring the PyTorch forward."""
    if deep_nno:
        diff = (x[:, None, :] - means[None, :, :]) ** 2
        cum = diff.sum(-1)
        expn = -cum / 2.0
        return jnp.exp(expn), expn, cum
    xs = x / variance[0]
    diff = xs[:, None, :] - means[None, :, :]
    cum = jnp.sqrt((diff ** 2).sum(-1))
    expn = -cum
    return jax.nn.softmax(expn, axis=1), expn, cum


if __name__ == "__main__":
    # Small shapes consistent with the module: batch=2, features=32, classes=8.
    B, F, C = 2, 32, 8

    key = jax.random.PRNGKey(0)
    x = jax.random.normal(key, (B, F), dtype=jnp.float32)

    # Deterministic parameter init exactly as in NCM_classifier.__init__:
    #   means = zeros(num_classes, features), variance = zeros(1) - 1
    means = jnp.zeros((C, F), dtype=jnp.float32)
    variance = jnp.zeros((1,), dtype=jnp.float32) - 1.0

    # Default branch (deep_nno=False, eval mode -> std = self.variance).
    probs, exponent, cumulative = ncm_forward(x, means, variance, deep_nno=False)
    jax.block_until_ready((probs, exponent, cumulative))
    p_r, e_r, c_r = _ncm_reference(x, means, variance, deep_nno=False)
    assert jnp.allclose(probs, p_r, rtol=1e-3, atol=1e-4)
    assert jnp.allclose(exponent, e_r, rtol=1e-3, atol=1e-3)
    assert jnp.allclose(cumulative, c_r, rtol=1e-3, atol=1e-3)

    # deep_nno branch (gaussian-style scores).
    probs_d, exponent_d, cumulative_d = ncm_forward(x, means, variance, deep_nno=True)
    jax.block_until_ready((probs_d, exponent_d, cumulative_d))
    p_r, e_r, c_r = _ncm_reference(x, means, variance, deep_nno=True)
    assert jnp.allclose(probs_d, p_r, rtol=1e-3, atol=1e-3)
    assert jnp.allclose(exponent_d, e_r, rtol=1e-3, atol=1e-3)
    assert jnp.allclose(cumulative_d, c_r, rtol=1e-3, atol=1e-3)

    # Optional bf16-MXU path (v6e/v7x throughput); looser tolerance expected.
    probs_b, exponent_b, cumulative_b = ncm_forward(
        x, means, variance, deep_nno=False, matmul_dtype=jnp.bfloat16)
    jax.block_until_ready((probs_b, exponent_b, cumulative_b))
    p_r, e_r, c_r = _ncm_reference(x, means, variance, deep_nno=False)
    assert jnp.allclose(probs_b, p_r, rtol=5e-2, atol=5e-2)
    assert jnp.allclose(cumulative_b, c_r, rtol=5e-2, atol=5e-2)

    print("KERNEL_OK")
</pallas_src>

<mosaic_0001>
module attributes {stable_mosaic.version = 11 : i64} {
  func.func @_ncm_kernel(%arg0: i32, %arg1: memref<8x32xf32, #tpu.memory_space<vmem>>, %arg2: memref<32x128xf32, #tpu.memory_space<vmem>>, %arg3: memref<1x128xf32, #tpu.memory_space<vmem>>, %arg4: memref<1xf32, #tpu.memory_space<smem>>, %arg5: memref<8x128xf32, #tpu.memory_space<vmem>>, %arg6: memref<8x128xf32, #tpu.memory_space<vmem>>) attributes {dimension_semantics = [#tpu.dimension_semantics<parallel>], iteration_bounds = array<i64: 1>, scalar_prefetch = 0 : i64, scratch_operands = 0 : i64, tpu.core_type = #tpu.core_type<tc>, window_params = [{transform_indices = @transform_0, window_bounds = array<i64: 8, 32>}, {pipeline_mode = #tpu.pipeline_mode<synchronous>, transform_indices = @transform_1, window_bounds = array<i64: 32, 128>}, {pipeline_mode = #tpu.pipeline_mode<synchronous>, transform_indices = @transform_2, window_bounds = array<i64: 1, 128>}, {transform_indices = @transform_3, window_bounds = array<i64: 1>}, {transform_indices = @transform_4, window_bounds = array<i64: 8, 128>}, {transform_indices = @transform_5, window_bounds = array<i64: 8, 128>}]} {
    %c0 = arith.constant 0 : index
    %c0_0 = arith.constant 0 : index
    %0 = vector.load %arg1[%c0, %c0_0] : memref<8x32xf32, #tpu.memory_space<vmem>>, vector<8x32xf32>
    %c0_1 = arith.constant 0 : index
    %c0_2 = arith.constant 0 : index
    %1 = vector.load %arg2[%c0_1, %c0_2] : memref<32x128xf32, #tpu.memory_space<vmem>>, vector<32x128xf32>
    %cst = arith.constant dense<0.000000e+00> : vector<8x128xf32>
    %2 = tpu.matmul %0, %1, %cst {dimension_numbers = #tpu.dot_dimension_numbers<[1], [0], [0], [1], [0, 0, 1, 1], [], []>} : vector<8x32xf32>, vector<32x128xf32>, vector<8x128xf32> -> vector<8x128xf32>
    %3 = arith.mulf %0, %0 : vector<8x32xf32>
    %cst_3 = arith.constant dense<0.000000e+00> : vector<8xf32>
    %4 = vector.multi_reduction <add>, %3, %cst_3 [1] : vector<8x32xf32> to vector<8xf32>
    %5 = vector.shape_cast %4 : vector<8xf32> to vector<8x1xf32>
    %c0_4 = arith.constant 0 : index
    %c0_5 = arith.constant 0 : index
    %6 = vector.load %arg3[%c0_4, %c0_5] : memref<1x128xf32, #tpu.memory_space<vmem>>, vector<1x128xf32>
    %c0_6 = arith.constant 0 : index
    %7 = memref.load %arg4[%c0_6] : memref<1xf32, #tpu.memory_space<smem>>
    %cst_7 = arith.constant 1.000000e+00 : f32
    %8 = arith.divf %cst_7, %7 : f32
    %9 = arith.mulf %8, %8 : f32
    %10 = vector.broadcast %9 : f32 to vector<8x1xf32>
    %11 = arith.mulf %10, %5 : vector<8x1xf32>
    %12 = vector.broadcast %11 : vector<8x1xf32> to vector<8x128xf32>
    %13 = vector.broadcast %6 : vector<1x128xf32> to vector<8x128xf32>
    %14 = arith.addf %12, %13 : vector<8x128xf32>
    %cst_8 = arith.constant 2.000000e+00 : f32
    %15 = arith.mulf %cst_8, %8 : f32
    %16 = vector.broadcast %15 : f32 to vector<8x128xf32>
    %17 = arith.mulf %16, %2 : vector<8x128xf32>
    %18 = arith.subf %14, %17 : vector<8x128xf32>
    %cst_9 = arith.constant 0.000000e+00 : f32
    %19 = vector.broadcast %cst_9 : f32 to vector<8x128xf32>
    %20 = arith.maximumf %18, %19 : vector<8x128xf32>
    %21 = math.sqrt %20 : vector<8x128xf32>
    %cst_10 = arith.constant 0.000000e+00 : f32
    %22 = vector.broadcast %cst_10 : f32 to vector<8x128xf32>
    %23 = arith.subf %22, %21 : vector<8x128xf32>
    %24 = tpu.iota {dimensions = array<i32: 1>} : vector<8x128xi32>
    %c8_i32 = arith.constant 8 : i32
    %25 = vector.broadcast %c8_i32 : i32 to vector<8x128xi32>
    %26 = arith.cmpi slt, %24, %25 : vector<8x128xi32>
    %cst_11 = arith.constant 0xFF800000 : f32
    %27 = vector.broadcast %cst_11 : f32 to vector<8x128xf32>
    %28 = arith.select %26, %23, %27 : vector<8x128xi1>, vector<8x128xf32>
    %cst_12 = arith.constant dense<0xFF800000> : vector<8xf32>
    %29 = vector.multi_reduction <maximumf>, %28, %cst_12 [1] : vector<8x128xf32> to vector<8xf32>
    %30 = vector.shape_cast %29 : vector<8xf32> to vector<8x1xf32>
    %31 = vector.broadcast %30 : vector<8x1xf32> to vector<8x128xf32>
    %32 = arith.subf %28, %31 : vector<8x128xf32>
    %33 = math.exp %32 : vector<8x128xf32>
    %cst_13 = arith.constant dense<0.000000e+00> : vector<8xf32>
    %34 = vector.multi_reduction <add>, %33, %cst_13 [1] : vector<8x128xf32> to vector<8xf32>
    %35 = vector.shape_cast %34 : vector<8xf32> to vector<8x1xf32>
    %36 = vector.broadcast %35 : vector<8x1xf32> to vector<8x128xf32>
    %37 = arith.divf %33, %36 : vector<8x128xf32>
    %c0_14 = arith.constant 0 : index
    %c0_15 = arith.constant 0 : index
    %38 = vector.load %arg5[%c0_14, %c0_15] : memref<8x128xf32, #tpu.memory_space<vmem>>, vector<8x128xf32>
    tpu.vector_store %arg5[%c0_14, %c0_15], %37 {strides = array<i32>} : memref<8x128xf32, #tpu.memory_space<vmem>>, vector<8x128xf32>,
    %c0_16 = arith.constant 0 : index
    %c0_17 = arith.constant 0 : index
    %39 = vector.load %arg6[%c0_16, %c0_17] : memref<8x128xf32, #tpu.memory_space<vmem>>, vector<8x128xf32>
    tpu.vector_store %arg6[%c0_16, %c0_17], %21 {strides = array<i32>} : memref<8x128xf32, #tpu.memory_space<vmem>>, vector<8x128xf32>,
    return
  }
  func.func @transform_0(%arg0: i32) -> (i32, i32) {
    %c0_i32 = arith.constant 0 : i32
    %c0_i32_0 = arith.constant 0 : i32
    return %arg0, %c0_i32 : i32, i32
  }
  func.func @transform_1(%arg0: i32) -> (i32, i32) {
    %c0_i32 = arith.constant 0 : i32
    %c0_i32_0 = arith.constant 0 : i32
    %c0_i32_1 = arith.constant 0 : i32
    return %c0_i32, %c0_i32_0 : i32, i32
  }
  func.func @transform_2(%arg0: i32) -> (i32, i32) {
    %c0_i32 = arith.constant 0 : i32
    %c0_i32_0 = arith.constant 0 : i32
    %c0_i32_1 = arith.constant 0 : i32
    return %c0_i32, %c0_i32_0 : i32, i32
  }
  func.func @transform_3(%arg0: i32) -> i32 {
    %c0_i32 = arith.constant 0 : i32
    %c0_i32_0 = arith.constant 0 : i32
    return %c0_i32 : i32
  }
  func.func @transform_4(%arg0: i32) -> (i32, i32) {
    %c0_i32 = arith.constant 0 : i32
    %c0_i32_0 = arith.constant 0 : i32
    return %arg0, %c0_i32 : i32, i32
  }
  func.func @transform_5(%arg0: i32) -> (i32, i32) {
    %c0_i32 = arith.constant 0 : i32
    %c0_i32_0 = arith.constant 0 : i32
    return %arg0, %c0_i32 : i32, i32
  }
}

</mosaic_0001>

<bundles_post_ra>
// kernel: tpu_custom_call.1
= control target key start
LH: loop header
LB: loop body
LE: loop exit
PB: predicated region body
PF: predicated region fallthrough
CT: control target
= control target key end

     0   :  { %12 = vsyncpa [#allocation4], 0  ;;  %s384_s0 = inlined_call_operand.hbm [shape: f32[8,32], index: 0, kind: input, shape index: {}]   ;;  %s385_s1 = inlined_call_operand.hbm [shape: f32[32,128], index: 1, kind: input, shape index: {}]   ;;  %s386_s2 = inlined_call_operand.vmem [shape: f32[1,128], index: 2, kind: input, shape index: {}]   ;;  %s387_s3 = inlined_call_operand.<no memory space> [shape: f32[1], index: 3, kind: input, shape index: {}]   ;;  %s388_s4 = inlined_call_operand.hbm [shape: f32[8,128], index: 4, kind: output, shape index: {0}]   ;;  %s389_s5 = inlined_call_operand.hbm [shape: f32[8,128], index: 5, kind: output, shape index: {1}]  }
   0x1   :  { %13 = vsyncpa [#allocation7], 0 }
   0x2   :  { %14 = vsyncpa [#allocation5], 0 }
   0x3   :  { %15 = vsyncpa [#allocation10], 0  ;;  %s328_s18 = smov [#allocation3]   ;;  %s329_s20 = smov [#allocation6]  }
   0x4   :  { %s22_s19 = sshll.u32 %s328_s18, 4  ;;  %s31_s21 = sshll.u32 %s329_s20, 4  ;;  %s23_s19 = int_to_ptr.vmem [resolvable:$true] %s22_s19  ;;  %s32_s21 = int_to_ptr.vmem [resolvable:$true] %s31_s21 }
   0x5   :  { %s248_s22 = scalar_lea.vmem %s23_s19, 128  ;;  %p253_p1 = scmp.lt.s32.totalorder %s23_s19, %s23_s19 }
   0x6   :  { %p249_p0 = scmp.ne.s32.totalorder %s23_s19, %s248_s22  ;;  %p254_p2 = scmp.lt.s32.totalorder %s248_s22, %s248_s22 }
   0x8   :  { %p255_p3 = por %p254_p2, %p253_p1 }
   0xa   :  { %p256_p4 = pnand %p255_p3, %p249_p0 }
   0xc   :  { %259 = shalt.err (!%p256_p4)
}
   0xd   :  { %25 = dma.hbm_to_vmem [thread:$0]  %s384_s0, 128, %s23_s19, [#allocation4]  }
   0xe   :  { %s268_s25 = scalar_lea.vmem %s32_s21, 512  ;;  %p273_p6 = scmp.lt.s32.totalorder %s32_s21, %s32_s21 }
   0xf   :  { %p269_p5 = scmp.ne.s32.totalorder %s32_s21, %s268_s25  ;;  %p274_p7 = scmp.lt.s32.totalorder %s268_s25, %s268_s25 }
  0x11   :  { %p275_p8 = por %p274_p7, %p273_p6 }
  0x13   :  { %p276_p9 = pnand %p275_p8, %p269_p5 }
  0x15   :  { %279 = shalt.err (!%p276_p9)
}
  0x16   :  { %s330_s26 = smov 128   ;;  %s331_s27 = smov 8  }
  0x17   :  { %37 = dma.hbm_to_vmem [thread:$0]  %s385_s1, 512, %s32_s21, [#allocation7], %s330_s26, %s330_s26, %s331_s27  }
  0x18   :  { %320 = dma.done.wait [#allocation4], 128  }
  0x19   :  { %321 = vsyncadd [#allocation4], 4294967168 }
  0x1a   :  { %322 = dma.done.wait [#allocation7], 512  }
  0x1b   :  { %323 = vsyncadd [#allocation7], 4294966784  ;;  %v133_v0 = vstv %s387_s3  ;;  %v332_v1 = vmov 0.0   ;;  %vm333_vm0 = vmmov 0   ;;  %v52_v2 = vld [vmem:[#allocation6 + $0x18] sm:$0xff]  ;;  %v51_v3 = vld [vmem:[#allocation6 + $0x10] sm:$0xff]  ;;  %v159_v21 = vlaneseq }
  0x1c   :  { %211 = vmatprep.subr.mxu0 %v332_v1  ;;  %219 = vmatprep.mubr.msk.f32.mxu0 %vm333_vm0, %v332_v1  ;;  %232 = vrcp.f32 %v133_v0  ;;  %v48_v4 = vld [vmem:[#allocation3] sm:$0xff]  ;;  %v50_v5 = vld [vmem:[#allocation6 + $0x8] sm:$0xff]  ;;  %vm53_vm1 = vcmask 261120   ;;  %v49_v7 = vld [vmem:[#allocation6] sm:$0xff] }
  0x1d   :  { %212 = vmatpush3.msra.mxu0 %v52_v2  ;;  %v127_v6 = vmul.f32 %v48_v4, %v48_v4  ;;  %v205_v13 = vld [vmem:[%s386_s2] ss:$0 sm:$0xff]  ;;  %v160_v23 = vand.u32 127, %v159_v21  ;;  %s334_s2 = smov [#allocation9]  }
  0x1e   :  { %213 = vmatprep.subr.mxu0 %v332_v1  ;;  %s190_s9 = sshll.u32 %s334_s2, 4  ;;  %s191_s9 = int_to_ptr.vmem [resolvable:$true] %s190_s9 }
  0x1f   :  { %214 = vmatpush3.msra.mxu0 %v51_v3  ;;  %v128_v8 = vsel %vm53_vm1, %v127_v6, 0.0  ;;  %vm161_vm4 = vcmp.lt.s32.totalorder %v160_v23, 8  ;;  %s280_s10 = scalar_lea.vmem %s191_s9, 128  ;;  %p285_p11 = scmp.lt.s32.totalorder %s191_s9, %s191_s9 }
  0x20   :  { %215 = vmatprep.subr.mxu0 %v332_v1  ;;  %129 = vadd.xlane.f32.xlu0 %v128_v8  ;;  %p281_p10 = scmp.ne.s32.totalorder %s191_s9, %s280_s10  ;;  %p286_p12 = scmp.lt.s32.totalorder %s280_s10, %s280_s10 }
  0x21   :  { %216 = vmatpush3.msra.mxu0 %v50_v5 }
  0x22   :  { %217 = vmatprep.subr.mxu0 %v332_v1  ;;  %p287_p13 = por %p286_p12, %p285_p11 }
  0x23   :  { %218 = vmatpush3.msra.mxu0 %v49_v7 }
  0x24   :  { %220 = vmatmul.mubr.msk.f32.vlgmr.msra.gmra.mxu0 %vm53_vm1, %v48_v4  ;;  %p288_p0 = pnand %p287_p13, %p281_p10 }
  0x29   :  { %v233_v9 = vpop.eup %232 }
  0x2a   :  { %222 = vpush %v233_v9 }
  0x5b   :  { %s223_s0 = spop %222 }
  0x5c   :  { %s136_s1 = smul.f32 %s223_s0, %s223_s0 }
  0x5d   :  { %s146_s3 = smul.f32 2.0, %s223_s0 }
  0x5e   :  { %v137_v10 = vstv %s136_s1 }
  0x5f   :  { %v147_v15 = vstv %s146_s3 }
  0xa9   :  { %v130_v11 = vpop.xlane.xlu0 %129 }
  0xaa   :  { %v138_v12 = vmul.f32 %v137_v10, %v130_v11 }
  0xac   :  { %v145_v14 = vadd.f32 %v205_v13, %v138_v12 }
  0xe4   :  { %v123_v16 = vpop.f32.mrf.mxu0 }
  0xe5   :  { %v148_v17 = vmul.f32 %v147_v15, %v123_v16 }
  0xe6   :  { %v221_v18 = vpop.f32.mrf.mxu0 }
  0xe7   :  { %v149_v19 = vsub.f32 %v145_v14, %v148_v17 }
  0xe9   :  { %v150_v20 = vmax.f32 %v149_v19, 0.0 }
  0xeb   :  { %234 = vrsqrt.f32 %v150_v20  ;;  %vm153_vm2 = vcmp.eq.f32.partialorder %v150_v20, inf  ;;  %v156_v25 = vand.u32 2147483648, %v150_v20  ;;  %vm155_vm3 = vcmp.eq.f32.partialorder %v150_v20, 0.0 }
  0xf8   :  { %v235_v22 = vpop.eup %234 }
  0xf9   :  { %v152_v24 = vmul.f32 %v235_v22, %v150_v20 }
  0xfb   :  { %v154_v26 = vsel %vm153_vm2, %v150_v20, %v152_v24 }
  0xfc   :  { %v157_v27 = vsel %vm155_vm3, %v156_v25, %v154_v26 }
  0xfd   :  { %v158_v28 = vsub.f32 0.0, %v157_v27  ;;  %173 = vst [vmem:[#allocation9] sm:$0xff] %v157_v27 }
  0xff   :  { %v162_v29 = vsel %vm161_vm4, %v158_v28, -inf }
 0x100   :  { %163 = vmax.xlane.f32.xlu0 %v162_v29 }
 0x189   :  { %v164_v30 = vpop.xlane.xlu0 %163 }
 0x18a   :  { %v165_v31 = vsub.f32 %v162_v29, %v164_v30 }
 0x18c   :  { %v166_v32 = vmul.f32 1.442695, %v165_v31 }
 0x18e   :  { %236 = vpow2.f32 %v166_v32 }
 0x19b   :  { %v237_v33 = vpop.eup %236 }
 0x19c   :  { %168 = vadd.xlane.f32.xlu1 %v237_v33 }
 0x19d   :  { %291 = shalt.err (!%p288_p0)
}
 0x19e   :  { %193 = dma.vmem_to_hbm [thread:$0]  %s191_s9, 128, %s389_s5, [#allocation10]  }
 0x19f   :  { %s335_s13 = smov [#allocation8]  }
 0x1a0   :  { %s180_s14 = sshll.u32 %s335_s13, 4  ;;  %s181_s14 = int_to_ptr.vmem [resolvable:$true] %s180_s14 }
 0x1a1   :  { %s300_s15 = scalar_lea.vmem %s181_s14, 128  ;;  %p305_p2 = scmp.lt.s32.totalorder %s181_s14, %s181_s14 }
 0x1a2   :  { %p301_p1 = scmp.ne.s32.totalorder %s181_s14, %s300_s15  ;;  %p306_p3 = scmp.lt.s32.totalorder %s300_s15, %s300_s15 }
 0x1a4   :  { %p307_p4 = por %p306_p3, %p305_p2 }
 0x1a6   :  { %p308_p5 = pnand %p307_p4, %p301_p1 }
 0x225   :  { %v169_v34 = vpop.xlane.xlu1 %168 }
 0x226   :  { %238 = vrcp.f32 %v169_v34 }
 0x233   :  { %v239_v35 = vpop.eup %238 }
 0x234   :  { %v171_v36 = vmul.f32 %v239_v35, %v237_v33 }
 0x236   :  { %172 = vst [vmem:[#allocation8] sm:$0xff] %v171_v36 }
 0x237   :  { %311 = shalt.err (!%p308_p5)
}
 0x238   :  { %183 = dma.vmem_to_hbm [thread:$0]  %s181_s14, 128, %s388_s4, [#allocation5]  }
 0x239   :  { %324 = dma.done.wait [#allocation5], 128  }
 0x23a   :  { %325 = vsyncadd [#allocation5], 4294967168 }
 0x23b   :  { %326 = dma.done.wait [#allocation10], 128  }
 0x23c   :  { %327 = vsyncadd [#allocation10], 4294967168 }
 0x23d   :  { %200 = vsyncpa [#allocation4], 1 }
 0x23e   :  { %201 = vsyncpa [#allocation7], 1 }
 0x23f   :  { %202 = vsyncpa [#allocation5], 1 }
 0x240   :  { %203 = vsyncpa [#allocation10], 1 }

</bundles_post_ra>
